<compile_context>
chip_gen: v5e
topology: v5e:2x2
jax: 0.10.0
libtpu: 0.0.40
codegen_flags: <defaults>
</compile_context>

<pallas_src>
import functools

import jax
import jax.numpy as jnp
from jax import lax
from jax.experimental import pallas as pl
from jax.experimental.pallas import tpu as pltpu


# ----------------------------------------------------------------------------
# helpers
# ----------------------------------------------------------------------------
def _pick_tile(dim: int, cap: int, align: int) -> int:
    """Largest tile <= cap that divides `dim`, preferring `align` multiples.

    Never returns more than `cap` when dim > cap (the previous full-dim
    fallback was a latent VMEM blow-up on non-divisible shapes)."""
    if dim <= cap:
        return dim
    for step in (align, 8, 1):
        t = (cap // step) * step
        while t >= step:
            if dim % t == 0:
                return t
            t -= step
    return 1


# ----------------------------------------------------------------------------
# Kernel 1: tiled dense projection  y = x @ W + b
#   grid = (M/tm, N/tn, K/tk); f32 accumulator in VMEM, bias added at the end.
#   The activation cast to the MXU input dtype (bf16) is fused in-kernel.
# ----------------------------------------------------------------------------
def _linear_kernel(x_ref, w_ref, b_ref, o_ref, acc_ref):
    k = pl.program_id(2)

    @pl.when(k == 0)
    def _():
        acc_ref[...] = jnp.zeros_like(acc_ref)

    # Fused activation cast: x arrives in its HBM dtype (f32 for the first
    # projection) and is cast to bf16 here -> no wrapper-side cast pass.
    a = x_ref[...].astype(w_ref.dtype)
    acc_ref[...] += jnp.dot(a, w_ref[...], preferred_element_type=jnp.float32)

    @pl.when(k == pl.num_programs(2) - 1)
    def _():
        o_ref[...] = (acc_ref[...] + b_ref[...]).astype(o_ref.dtype)


def linear(x, w, b, out_dtype):
    """x: (M, K) f32/bf16, w: (K, N) bf16, b: (N,) f32 -> (M, N) out_dtype."""
    M, K = x.shape
    N = w.shape[1]
    # Tile caps (512/512/1024, 128-aligned).  Worst-case working set:
    #   x 2 x (512*1024*4B) + w 2 x (1024*512*2B) + acc 512*512*4B
    #   + out 2 x (512*512*4B)  ~= 9 MiB  -> fits the default scoped-VMEM
    # budget on v5e/v6e/v7x, so no vmem_limit_bytes override is required.
    tm = _pick_tile(M, 512, 128)
    tn = _pick_tile(N, 512, 128)
    tk = _pick_tile(K, 1024, 128)
    grid = (M // tm, N // tn, K // tk)

    cost = pl.CostEstimate(
        flops=2 * M * K * N,
        transcendentals=0,
        bytes_accessed=((N // tn) * M * K * x.dtype.itemsize       # x re-streams
                        + (M // tm) * K * N * w.dtype.itemsize     # w re-streams
                        + M * N * jnp.dtype(out_dtype).itemsize
                        + N * 4),
    )
    return pl.pallas_call(
        _linear_kernel,
        grid=grid,
        in_specs=[
            pl.BlockSpec((tm, tk), lambda i, j, k: (i, k)),
            pl.BlockSpec((tk, tn), lambda i, j, k: (k, j)),
            pl.BlockSpec((1, tn), lambda i, j, k: (0, j)),
        ],
        out_specs=pl.BlockSpec((tm, tn), lambda i, j, k: (i, j)),
        out_shape=jax.ShapeDtypeStruct((M, N), out_dtype),
        scratch_shapes=[pltpu.VMEM((tm, tn), jnp.float32)],
        compiler_params=pltpu.CompilerParams(
            dimension_semantics=("parallel", "parallel", "arbitrary")),
        cost_estimate=cost,
    )(x, w, b.reshape(1, N))


# ----------------------------------------------------------------------------
# Kernel 2: flash-style attention with online softmax.
#   qkv viewed as (B, S, 3, E); lane-dense (tq, E)/(tk, E) blocks carry all
#   heads.  grid = (B, S/tq, S/tk); m / l / acc scratch persist across the
#   KV axis, so VMEM is bounded by the tile sizes regardless of S.
# ----------------------------------------------------------------------------
def _flash_attn_kernel(q_ref, k_ref, v_ref, o_ref, m_ref, l_ref, acc_ref, *,
                       num_heads, head_dim):
    ki = pl.program_id(2)
    H, D = num_heads, head_dim

    @pl.when(ki == 0)
    def _():
        m_ref[...] = jnp.full_like(m_ref, -jnp.inf)
        l_ref[...] = jnp.zeros_like(l_ref)
        acc_ref[...] = jnp.zeros_like(acc_ref)

    # Per-head MXU matmuls over lane-dense blocks.  Per-head operands are
    # contiguous lane-range slices (full-width vregs, no sublane-strided
    # relayout).  Mosaic serializes a head-batched dot_general into the same
    # per-head MXU sequence, and the explicit loop keeps only one (tq, tk)
    # probability tile live at a time (vreg-friendly).
    for h in range(H):
        qh = q_ref[:, h * D:(h + 1) * D]                 # (tq, D) bf16
        kh = k_ref[:, h * D:(h + 1) * D]                 # (tk, D) bf16
        vh = v_ref[:, h * D:(h + 1) * D]                 # (tk, D) bf16

        # q @ k^T without materializing a transpose (contract the last dims).
        # The 1/sqrt(D) scale is already folded into the Q projection weights.
        s = lax.dot_general(qh, kh, (((1,), (1,)), ((), ())),
                            preferred_element_type=jnp.float32)   # (tq, tk)

        m_prev = m_ref[h]                                           # (tq, 1)
        m_new = jnp.maximum(m_prev, jnp.max(s, axis=-1, keepdims=True))
        alpha = jnp.exp(m_prev - m_new)
        p = jnp.exp(s - m_new)                                      # f32 (v5e-safe)
        l_ref[h] = alpha * l_ref[h] + jnp.sum(p, axis=-1, keepdims=True)
        acc_ref[h] = alpha * acc_ref[h] + jnp.dot(
            p.astype(vh.dtype), vh, preferred_element_type=jnp.float32)
        m_ref[h] = m_new

    @pl.when(ki == pl.num_programs(2) - 1)
    def _():
        # Single vectorized normalization over all heads (EUP reciprocal),
        # then lane-range stores assemble the lane-dense (tq, E) output block;
        # the block DMAs to HBM as one dense slab and reshapes for free into
        # the (B*S, E) proj input (no head transpose in HBM).
        out = acc_ref[...] * pl.reciprocal(l_ref[...], approx=True)  # (H, tq, D)
        out = out.astype(o_ref.dtype)
        for h in range(H):
            o_ref[:, h * D:(h + 1) * D] = out[h]


def flash_attention(qkv, num_heads):
    """qkv: (B, S, 3, E) bf16 -> (B, S, E) bf16."""
    B, S, _, E = qkv.shape
    D = E // num_heads
    # 256 q/k tiles fill the 256x256 MXU on v6e/v7x and halve per-grid-step
    # overhead vs 128; the double-buffered q/k/v/out blocks + f32 acc are
    # ~6 MiB at E=1024, H=16 -> inside every generation's default VMEM budget
    # (v5e's 4x128 MXU simply consumes the tile in more passes).
    tq = _pick_tile(S, 256, 8)
    tk = _pick_tile(S, 256, 8)
    grid = (B, S // tq, S // tk)

    # q/k/v are three differently-indexed lane-dense views of the SAME qkv
    # array (axis 2 selects q/k/v); nothing is split or transposed in HBM.
    q_spec = pl.BlockSpec((None, tq, None, E), lambda b, qi, ki: (b, qi, 0, 0))
    k_spec = pl.BlockSpec((None, tk, None, E), lambda b, qi, ki: (b, ki, 1, 0))
    v_spec = pl.BlockSpec((None, tk, None, E), lambda b, qi, ki: (b, ki, 2, 0))
    o_spec = pl.BlockSpec((None, tq, E), lambda b, qi, ki: (b, qi, 0))

    kv_restream = S // tq     # K/V blocks are re-streamed once per q row-block
    cost = pl.CostEstimate(
        flops=4 * B * num_heads * S * S * D,
        transcendentals=B * num_heads * S * S,
        bytes_accessed=(B * S * E * qkv.dtype.itemsize                       # q
                        + 2 * kv_restream * B * S * E * qkv.dtype.itemsize   # k,v
                        + B * S * E * 2),                                    # out
    )
    return pl.pallas_call(
        functools.partial(_flash_attn_kernel, num_heads=num_heads, head_dim=D),
        grid=grid,
        in_specs=[q_spec, k_spec, v_spec],
        out_specs=o_spec,
        out_shape=jax.ShapeDtypeStruct((B, S, E), jnp.bfloat16),
        scratch_shapes=[
            pltpu.VMEM((num_heads, tq, 1), jnp.float32),   # running row max
            pltpu.VMEM((num_heads, tq, 1), jnp.float32),   # running denominator
            pltpu.VMEM((num_heads, tq, D), jnp.float32),   # output accumulator
        ],
        # B and S/tq are parallel (keeps both v7x TensorCores busy for B >= 2
        # or S > tq); the KV axis carries the online-softmax state.
        compiler_params=pltpu.CompilerParams(
            dimension_semantics=("parallel", "parallel", "arbitrary")),
        cost_estimate=cost,
    )(qkv, qkv, qkv)


# ----------------------------------------------------------------------------
# Parameter prep (one-time) + full module forward
# ----------------------------------------------------------------------------
def prepare_params(params, num_heads):
    """Fold the 1/sqrt(D) attention scale into the Q projection and pre-cast
    the weights to bf16 once, outside the per-call path."""
    E = params["w_proj"].shape[0]
    D = E // num_heads
    scale = jnp.float32(D ** -0.5)
    col_scale = jnp.concatenate([jnp.full((E,), scale, jnp.float32),
                                 jnp.ones((2 * E,), jnp.float32)])
    w_qkv = params["w_qkv"].astype(jnp.float32) * col_scale[None, :]
    b_qkv = params["b_qkv"].astype(jnp.float32) * col_scale
    return {
        "w_qkv": w_qkv.astype(jnp.bfloat16),
        "b_qkv": b_qkv,                                    # f32: added to f32 acc
        "w_proj": params["w_proj"].astype(jnp.bfloat16),
        "b_proj": params["b_proj"].astype(jnp.float32),
    }


def multi_head_attention(x, prepared, num_heads):
    """x: (B, S, E) f32 -> (B, S, E) f32.  mask=None, eval mode (dropout=id)."""
    B, S, E = x.shape

    # qkv projection -> (B*S, 3E) bf16; the f32->bf16 activation cast is fused
    # into the kernel, and the reshape below is a free view.
    qkv = linear(x.reshape(B * S, E), prepared["w_qkv"], prepared["b_qkv"],
                 out_dtype=jnp.bfloat16)
    qkv = qkv.reshape(B, S, 3, E)

    o = flash_attention(qkv, num_heads)                    # (B, S, E) bf16
    out = linear(o.reshape(B * S, E), prepared["w_proj"], prepared["b_proj"],
                 out_dtype=jnp.float32)
    return out.reshape(B, S, E)


# ----------------------------------------------------------------------------
# Pure-JAX f32 reference for a correctness check
# ----------------------------------------------------------------------------
def reference(x, params, num_heads):
    B, S, E = x.shape
    D = E // num_heads
    qkv = x @ params["w_qkv"] + params["b_qkv"]
    q, k, v = jnp.split(qkv, 3, axis=-1)
    q = q.reshape(B, S, num_heads, D).transpose(0, 2, 1, 3)
    k = k.reshape(B, S, num_heads, D).transpose(0, 2, 1, 3)
    v = v.reshape(B, S, num_heads, D).transpose(0, 2, 1, 3)
    attn = jnp.einsum("bhqd,bhkd->bhqk", q, k) * (D ** -0.5)
    attn = attn - jnp.max(attn, axis=-1, keepdims=True)
    attn = jax.nn.softmax(attn, axis=-1)
    o = jnp.einsum("bhqk,bhkd->bhqd", attn, v)
    o = o.transpose(0, 2, 1, 3).reshape(B, S, E)
    return o @ params["w_proj"] + params["b_proj"]


if __name__ == "__main__":
    # Small shapes consistent with the module's forward: (batch, seq, embed)
    B, S, E, H = 2, 8, 32, 4

    key = jax.random.PRNGKey(0)
    k_x, k_wqkv, k_bqkv, k_wp, k_bp = jax.random.split(key, 5)

    x = jax.random.normal(k_x, (B, S, E), dtype=jnp.float32)

    # nn.Linear-like parameters stored as (in, out) so y = x @ W + b matches
    # PyTorch's x @ weight.T + bias.
    params = {
        "w_qkv": jax.random.normal(k_wqkv, (E, 3 * E), dtype=jnp.float32) * 0.05,
        "b_qkv": jax.random.normal(k_bqkv, (3 * E,), dtype=jnp.float32) * 0.05,
        "w_proj": jax.random.normal(k_wp, (E, E), dtype=jnp.float32) * 0.05,
        "b_proj": jax.random.normal(k_bp, (E,), dtype=jnp.float32) * 0.05,
    }

    prepared = prepare_params(params, num_heads=H)
    out = multi_head_attention(x, prepared, num_heads=H)
    out = jax.block_until_ready(out)

    ref = reference(x, params, num_heads=H)
    assert out.shape == (B, S, E)
    # Tolerance loosened vs. the f32 reference: MXU inputs are bf16 (with f32
    # accumulation) and the softmax denominator uses the approx reciprocal.
    max_err = float(jnp.max(jnp.abs(out - ref)))
    assert jnp.allclose(out, ref, atol=5e-2, rtol=5e-2), (
        f"mismatch vs reference (max abs err {max_err})")

    print("KERNEL_OK")
</pallas_src>

<mosaic_0001>
module attributes {stable_mosaic.version = 11 : i64} {
  func.func @_linear_kernel(%arg0: i32, %arg1: i32, %arg2: i32, %arg3: memref<16x32xf32, #tpu.memory_space<vmem>>, %arg4: memref<32x96xbf16, #tpu.memory_space<vmem>>, %arg5: memref<1x96xf32, #tpu.memory_space<vmem>>, %arg6: memref<16x96xbf16, #tpu.memory_space<vmem>>, %arg7: memref<16x96xf32, #tpu.memory_space<vmem>>) attributes {dimension_semantics = [#tpu.dimension_semantics<parallel>, #tpu.dimension_semantics<parallel>, #tpu.dimension_semantics<arbitrary>], iteration_bounds = array<i64: 1, 1, 1>, scalar_prefetch = 0 : i64, scratch_operands = 1 : i64, tpu.core_type = #tpu.core_type<tc>, window_params = [{transform_indices = @transform_0, window_bounds = array<i64: 16, 32>}, {transform_indices = @transform_1, window_bounds = array<i64: 32, 96>}, {transform_indices = @transform_2, window_bounds = array<i64: 1, 96>}, {transform_indices = @transform_3, window_bounds = array<i64: 16, 96>}]} {
    %c0_i32 = arith.constant 0 : i32
    %0 = arith.cmpi eq, %arg2, %c0_i32 : i32
    %1 = arith.extui %0 : i1 to i32
    %c0_i32_0 = arith.constant 0 : i32
    %2 = arith.cmpi ne, %1, %c0_i32_0 : i32
    scf.if %2 {
      %cst_10 = arith.constant 0.000000e+00 : f32
      %13 = vector.broadcast %cst_10 : f32 to vector<16x96xf32>
      %c0_11 = arith.constant 0 : index
      %c0_12 = arith.constant 0 : index
      %14 = vector.load %arg7[%c0_11, %c0_12] : memref<16x96xf32, #tpu.memory_space<vmem>>, vector<16x96xf32>
      tpu.vector_store %arg7[%c0_11, %c0_12], %13 {strides = array<i32>} : memref<16x96xf32, #tpu.memory_space<vmem>>, vector<16x96xf32>,
    } else {
    }
    %c0 = arith.constant 0 : index
    %c0_1 = arith.constant 0 : index
    %3 = vector.load %arg3[%c0, %c0_1] : memref<16x32xf32, #tpu.memory_space<vmem>>, vector<16x32xf32>
    %4 = arith.truncf %3 : vector<16x32xf32> to vector<16x32xbf16>
    %c0_2 = arith.constant 0 : index
    %c0_3 = arith.constant 0 : index
    %5 = vector.load %arg7[%c0_2, %c0_3] : memref<16x96xf32, #tpu.memory_space<vmem>>, vector<16x96xf32>
    %c0_4 = arith.constant 0 : index
    %c0_5 = arith.constant 0 : index
    %6 = vector.load %arg4[%c0_4, %c0_5] : memref<32x96xbf16, #tpu.memory_space<vmem>>, vector<32x96xbf16>
    %cst = arith.constant dense<0.000000e+00> : vector<16x96xf32>
    %7 = tpu.matmul %4, %6, %cst {dimension_numbers = #tpu.dot_dimension_numbers<[1], [0], [0], [1], [0, 0, 1, 1], [], []>} : vector<16x32xbf16>, vector<32x96xbf16>, vector<16x96xf32> -> vector<16x96xf32>
    %8 = arith.addf %5, %7 : vector<16x96xf32>
    %c0_6 = arith.constant 0 : index
    %c0_7 = arith.constant 0 : index
    %9 = vector.load %arg7[%c0_6, %c0_7] : memref<16x96xf32, #tpu.memory_space<vmem>>, vector<16x96xf32>
    tpu.vector_store %arg7[%c0_6, %c0_7], %8 {strides = array<i32>} : memref<16x96xf32, #tpu.memory_space<vmem>>, vector<16x96xf32>,
    %c0_i32_8 = arith.constant 0 : i32
    %10 = arith.cmpi eq, %arg2, %c0_i32_8 : i32
    %11 = arith.extui %10 : i1 to i32
    %c0_i32_9 = arith.constant 0 : i32
    %12 = arith.cmpi ne, %11, %c0_i32_9 : i32
    scf.if %12 {
      %c0_10 = arith.constant 0 : index
      %c0_11 = arith.constant 0 : index
      %13 = vector.load %arg7[%c0_10, %c0_11] : memref<16x96xf32, #tpu.memory_space<vmem>>, vector<16x96xf32>
      %c0_12 = arith.constant 0 : index
      %c0_13 = arith.constant 0 : index
      %14 = vector.load %arg5[%c0_12, %c0_13] : memref<1x96xf32, #tpu.memory_space<vmem>>, vector<1x96xf32>
      %15 = vector.broadcast %14 : vector<1x96xf32> to vector<16x96xf32>
      %16 = arith.addf %13, %15 : vector<16x96xf32>
      %17 = arith.truncf %16 : vector<16x96xf32> to vector<16x96xbf16>
      %c0_14 = arith.constant 0 : index
      %c0_15 = arith.constant 0 : index
      %18 = vector.load %arg6[%c0_14, %c0_15] : memref<16x96xbf16, #tpu.memory_space<vmem>>, vector<16x96xbf16>
      tpu.vector_store %arg6[%c0_14, %c0_15], %17 {strides = array<i32>} : memref<16x96xbf16, #tpu.memory_space<vmem>>, vector<16x96xbf16>,
    } else {
    }
    return
  }
  func.func @transform_0(%arg0: i32, %arg1: i32, %arg2: i32) -> (i32, i32) {
    %c0_i32 = arith.constant 0 : i32
    return %arg0, %arg2 : i32, i32
  }
  func.func @transform_1(%arg0: i32, %arg1: i32, %arg2: i32) -> (i32, i32) {
    %c0_i32 = arith.constant 0 : i32
    return %arg2, %arg1 : i32, i32
  }
  func.func @transform_2(%arg0: i32, %arg1: i32, %arg2: i32) -> (i32, i32) {
    %c0_i32 = arith.constant 0 : i32
    %c0_i32_0 = arith.constant 0 : i32
    return %c0_i32, %arg1 : i32, i32
  }
  func.func @transform_3(%arg0: i32, %arg1: i32, %arg2: i32) -> (i32, i32) {
    %c0_i32 = arith.constant 0 : i32
    return %arg0, %arg1 : i32, i32
  }
}

</mosaic_0001>

<bundles_post_ra>
// kernel: tpu_custom_call.1
= control target key start
LH: loop header
LB: loop body
LE: loop exit
PB: predicated region body
PF: predicated region fallthrough
CT: control target
= control target key end

     0   :  { %8 = vsyncpa [#allocation4], 0  ;;  %s283_s0 = inlined_call_operand.hbm [shape: f32[16,32], index: 0, kind: input, shape index: {}]   ;;  %s284_s1 = inlined_call_operand.hbm [shape: bf16[32,96], index: 1, kind: input, shape index: {}]   ;;  %s285_s2 = inlined_call_operand.vmem [shape: f32[1,96], index: 2, kind: input, shape index: {}]   ;;  %s286_s3 = inlined_call_operand.hbm [shape: bf16[16,96], index: 3, kind: output, shape index: {}]  }
   0x1   :  { %9 = vsyncpa [#allocation7], 0 }
   0x2   :  { %10 = vsyncpa [#allocation5], 0  ;;  %s15_s14 = sshll.u32 %s283_s0, 4  ;;  %s233_s15 = smov [#allocation3]   ;;  %s16_s14 = int_to_ptr.hbm [resolvable:$true] %s15_s14 }
   0x3   :  { %s17_s16 = sshll.u32 %s233_s15, 4  ;;  %s28_s19 = sshll.u32 %s284_s1, 4  ;;  %s18_s16 = int_to_ptr.vmem [resolvable:$true] %s17_s16  ;;  %s29_s19 = int_to_ptr.hbm [resolvable:$true] %s28_s19 }
   0x4   :  { %s234_s20 = smov 128   ;;  %s235_s21 = smov 8  }
   0x5   :  { %23 = dma.hbm_to_vmem [thread:$0]  %s16_s14, 256, %s18_s16, [#allocation4], %s234_s20, %s234_s20, %s235_s21  }
   0x6   :  { %s236_s22 = smov [#allocation6]   ;;  %s237_s24 = smov 64  }
   0x7   :  { %s30_s23 = sshll.u32 %s236_s22, 4  ;;  %s238_s25 = smov 4   ;;  %s31_s23 = int_to_ptr.vmem [resolvable:$true] %s30_s23 }
   0x8   :  { %36 = dma.hbm_to_vmem [thread:$0]  %s29_s19, 256, %s31_s23, [#allocation7], %s237_s24, %s237_s24, %s238_s25  }
   0x9   :  { %227 = dma.done.wait [#allocation4], 256  }
   0xa   :  { %228 = vsyncadd [#allocation4], 4294967040 }
   0xb   :  { %229 = dma.done.wait [#allocation7], 256  }
   0xc   :  { %230 = vsyncadd [#allocation7], 4294967040  ;;  %vm52_vm0 = vcmask 785408   ;;  %v239_v0 = vmov 0.0   ;;  %v145_v1 = vld [vmem:[#allocation6 + $0x8] sm:$0xff]  ;;  %v144_v2 = vld [vmem:[#allocation6] sm:$0xff] }
   0xd   :  { %53 = vst.msk [vmem:[#allocation2] sm:$0xff] %vm52_vm0, %v239_v0  ;;  %86 = vmatpush.bf16.msra.mxu0 %v145_v1  ;;  %v55_v3 = vld [vmem:[#allocation3] sm:$0xff]  ;;  %v56_v4 = vld [vmem:[#allocation3 + $0x8] sm:$0xff]  ;;  %vm76_vm1 = vcmask 261120   ;;  %v154_v10 = vld [vmem:[%s285_s2] ss:$0 sm:$0xff] }
   0xe   :  { %54 = vst.msk [vmem:[#allocation2 + $0x8] sm:$0xff] %vm52_vm0, %v239_v0  ;;  %v57_v5 = vpack.c.bf16 %v56_v4, %v55_v3  ;;  %vm112_vm2 = vcmask 781312   ;;  %s240_s26 = smov [#allocation8]   ;;  %s121_s30 = sshll.u32 %s286_s3, 4  ;;  %s122_s30 = int_to_ptr.hbm [resolvable:$true] %s121_s30 }
   0xf   :  { %s119_s27 = sshll.u32 %s240_s26, 4  ;;  %s120_s27 = int_to_ptr.vmem [resolvable:$true] %s119_s27 }
  0x11   :  { %87 = vmatpush.bf16.msra.mxu0 %v144_v2 }
  0x14   :  { %143 = vmatmul.msk.bf16.vlgmr.msra.gmra.mxu0 %vm76_vm1, %v57_v5  ;;  %v58_v6 = vld [vmem:[#allocation2] sm:$0xff] }
  0x15   :  { %v59_v9 = vld [vmem:[#allocation2 + $0x8] sm:$0xff] }
  0x91   :  { %v89_v7 = vpop.f32.mrf.mxu0 }
  0x92   :  { %v94_v8 = vadd.f32 %v89_v7, %v58_v6 }
  0x94   :  { %97 = vst.msk [vmem:[#allocation2] sm:$0xff] %vm52_vm0, %v94_v8 }
  0x99   :  { %v91_v11 = vpop.f32.mrf.mxu0 }
  0x9a   :  { %v95_v12 = vadd.f32 %v91_v11, %v59_v9 }
  0x9b   :  { %v102_v13 = vld [vmem:[#allocation2] sm:$0xff] }
  0x9c   :  { %98 = vst.msk [vmem:[#allocation2 + $0x8] sm:$0xff] %vm52_vm0, %v95_v12  ;;  %v108_v14 = vadd.f32 %v154_v10, %v102_v13 }
  0x9e   :  { %v110_v15 = vpack.c.bf16 %v108_v14, %v108_v14 }
  0xa0   :  { %113 = vst.msk [vmem:[#allocation8] sm:$0xf] %vm112_vm2, %v110_v15 }
  0xa3   :  { %v103_v16 = vld [vmem:[#allocation2 + $0x8] sm:$0xff] }
  0xa4   :  { %v109_v17 = vadd.f32 %v154_v10, %v103_v16 }
  0xa6   :  { %v111_v18 = vpack.c.bf16 %v109_v17, %v109_v17 }
  0xa8   :  { %114 = vst.msk [vmem:[#allocation8 + $0x4] sm:$0xf] %vm112_vm2, %v111_v18 }
  0xa9   :  { %127 = dma.vmem_to_hbm [thread:$0]  %s120_s27, 128, %s122_s30, [#allocation5], %s237_s24, %s237_s24, %s238_s25  }
  0xaa   :  { %231 = dma.done.wait [#allocation5], 128  }
  0xab   :  { %232 = vsyncadd [#allocation5], 4294967168 }
  0xac   :  { %132 = vsyncpa [#allocation4], 1 }
  0xad   :  { %133 = vsyncpa [#allocation7], 1 }
  0xae   :  { %134 = vsyncpa [#allocation5], 1 }

</bundles_post_ra>
